<compile_context>
chip_gen: v6e
topology: v6e:2x2x1
jax: 0.10.0
libtpu: 0.0.40
codegen_flags: <defaults>
</compile_context>

<pallas_src>
import functools

import jax
import jax.numpy as jnp
from jax.experimental import pallas as pl
from jax.experimental.pallas import tpu as pltpu

EPS = 1e-5
MOMENTUM = 0.1
_VMEM_LIMIT_BYTES = 32 << 20   # safe on v5e (raises 16MiB default) / v6e / v7x


def _stats_kernel(x_ref, gamma_ref, beta_ref, mm_ref, mv_ref,
                  scale_ref, shift_ref, new_mm_ref, new_mv_ref,
                  sum_sc, sumsq_sc, *, inv_count):
    """Accumulate per-channel sum / sumsq; finalize folded scale/shift + stats."""
    ni = pl.program_id(0)
    li = pl.program_id(1)
    first = jnp.logical_and(ni == 0, li == 0)
    last = jnp.logical_and(ni == pl.num_programs(0) - 1,
                           li == pl.num_programs(1) - 1)

    @pl.when(first)
    def _():
        sum_sc[...] = jnp.zeros_like(sum_sc)
        sumsq_sc[...] = jnp.zeros_like(sumsq_sc)

    x = x_ref[...].astype(jnp.float32)          # (1, C, tl)
    sum_sc[...] += jnp.sum(x, axis=2)           # (1, C)
    sumsq_sc[...] += jnp.sum(x * x, axis=2)     # (1, C)

    @pl.when(last)
    def _():
        mean = sum_sc[...] * inv_count
        # E[x^2] - mean^2 in f32; clamp to guard tiny negative from rounding.
        var = jnp.maximum(sumsq_sc[...] * inv_count - mean * mean, 0.0)
        inv_std = jax.lax.rsqrt(var + EPS)
        scale = gamma_ref[...] * inv_std
        shift = beta_ref[...] - mean * scale
        scale_ref[...] = scale
        shift_ref[...] = shift
        new_mm_ref[...] = (1.0 - MOMENTUM) * mm_ref[...] + MOMENTUM * mean
        new_mv_ref[...] = (1.0 - MOMENTUM) * mv_ref[...] + MOMENTUM * var


def _normalize_kernel(scale_ref, shift_ref, x_ref, y_ref):
    """y = x * scale + shift with per-channel folded parameters."""
    x = x_ref[...].astype(jnp.float32)          # (1, C, tl)
    scale = scale_ref[...][:, :, None]          # (1, C, 1)
    shift = shift_ref[...][:, :, None]          # (1, C, 1)
    y_ref[...] = (x * scale + shift).astype(y_ref.dtype)


def _pick_l_tile(l, c, itemsize):
    """Largest lane-dense L tile dividing L with a small double-buffered VMEM footprint."""
    if l % 128 != 0:
        return l  # full extent is always a legal block size
    # ~4 live (1, C, tl) buffers (in + out, double-buffered); keep under ~8 MiB.
    budget_elems = (8 << 20) // (max(int(itemsize), 4) * max(c, 1) * 4)
    tl = 128
    while (tl * 2) <= l and l % (tl * 2) == 0 and (tl * 2) <= budget_elems:
        tl *= 2
    return tl


def batch_norm_4d(x_nchw, gamma, beta, moving_mean, moving_var):
    """Training-mode BatchNorm over NCHW input.

    gamma/beta/moving_mean/moving_var have PyTorch shape (1, C, 1, 1).
    Returns (Y in NCHW, new_moving_mean, new_moving_var) in the same shapes.
    """
    n, c, h, w = x_nchw.shape
    l = h * w
    x3 = x_nchw.reshape(n, c, l)                       # free reshape, no transpose

    gamma2 = gamma.reshape(1, c).astype(jnp.float32)
    beta2 = beta.reshape(1, c).astype(jnp.float32)
    mm2 = moving_mean.reshape(1, c).astype(jnp.float32)
    mv2 = moving_var.reshape(1, c).astype(jnp.float32)

    itemsize = jnp.dtype(x3.dtype).itemsize
    tl = _pick_l_tile(l, c, itemsize)
    num_l = l // tl
    grid = (n, num_l)

    x_spec = pl.BlockSpec((1, c, tl), lambda ni, li: (ni, 0, li))
    param_spec = pl.BlockSpec((1, c), lambda ni, li: (0, 0))

    # ---- Phase 1: per-channel statistics -> folded scale/shift + moving stats
    stats_outs = tuple(jax.ShapeDtypeStruct((1, c), jnp.float32) for _ in range(4))
    scale, shift, new_mm, new_mv = pl.pallas_call(
        functools.partial(_stats_kernel, inv_count=1.0 / float(n * l)),
        out_shape=stats_outs,
        grid=grid,
        in_specs=[x_spec, param_spec, param_spec, param_spec, param_spec],
        out_specs=(param_spec, param_spec, param_spec, param_spec),
        scratch_shapes=[pltpu.VMEM((1, c), jnp.float32),
                        pltpu.VMEM((1, c), jnp.float32)],
        compiler_params=pltpu.CompilerParams(
            dimension_semantics=("arbitrary", "arbitrary"),
            vmem_limit_bytes=_VMEM_LIMIT_BYTES),
        cost_estimate=pl.CostEstimate(
            flops=3 * n * c * l,
            transcendentals=c,
            bytes_accessed=n * c * l * itemsize + 8 * c * 4),
    )(x3, gamma2, beta2, mm2, mv2)

    # ---- Phase 2: normalize (pure streaming, fully parallel tiles)
    y3 = pl.pallas_call(
        _normalize_kernel,
        out_shape=jax.ShapeDtypeStruct((n, c, l), x3.dtype),
        grid=grid,
        in_specs=[param_spec, param_spec, x_spec],
        out_specs=x_spec,
        compiler_params=pltpu.CompilerParams(
            dimension_semantics=("parallel", "parallel"),
            vmem_limit_bytes=_VMEM_LIMIT_BYTES),
        cost_estimate=pl.CostEstimate(
            flops=2 * n * c * l,
            transcendentals=0,
            bytes_accessed=2 * n * c * l * itemsize),
    )(scale, shift, x3)

    y = y3.reshape(n, c, h, w)
    new_mm4 = new_mm.reshape(1, c, 1, 1).astype(moving_mean.dtype)
    new_mv4 = new_mv.reshape(1, c, 1, 1).astype(moving_var.dtype)
    return y, new_mm4, new_mv4


def batch_norm_2d(x_nc, gamma, beta, moving_mean, moving_var):
    """2D (N, C) variant of the module: identical semantics via the 4D path."""
    # TODO(synk): a dedicated lane-dense 2D layout (channels on lanes) would be
    # faster; this reshape path is correct but lane-sparse for the 2D case.
    n, c = x_nc.shape
    y, mm, mv = batch_norm_4d(x_nc.reshape(n, c, 1, 1),
                              gamma.reshape(1, c, 1, 1),
                              beta.reshape(1, c, 1, 1),
                              moving_mean.reshape(1, c, 1, 1),
                              moving_var.reshape(1, c, 1, 1))
    return y.reshape(n, c), mm.reshape(1, c), mv.reshape(1, c)


def _reference(x, gamma, beta, mm, mv):
    mean = jnp.mean(x, axis=(0, 2, 3), keepdims=True)
    var = jnp.mean((x - mean) ** 2, axis=(0, 2, 3), keepdims=True)
    x_hat = (x - mean) / jnp.sqrt(var + EPS)
    y = gamma * x_hat + beta
    new_mm = (1.0 - MOMENTUM) * mm + MOMENTUM * mean
    new_mv = (1.0 - MOMENTUM) * mv + MOMENTUM * var
    return y, new_mm, new_mv


if __name__ == "__main__":
    key = jax.random.PRNGKey(0)
    N, C, H, W = 2, 4, 16, 16

    x = jax.random.normal(key, (N, C, H, W), dtype=jnp.float32)
    # Deterministic params, matching BatchNorm.__init__(num_features=C, num_dims=4)
    gamma = jnp.ones((1, C, 1, 1), dtype=jnp.float32)
    beta = jnp.zeros((1, C, 1, 1), dtype=jnp.float32)
    moving_mean = jnp.zeros((1, C, 1, 1), dtype=jnp.float32)
    moving_var = jnp.zeros((1, C, 1, 1), dtype=jnp.float32)

    y, new_mm, new_mv = batch_norm_4d(x, gamma, beta, moving_mean, moving_var)
    jax.block_until_ready((y, new_mm, new_mv))

    y_ref, mm_ref, mv_ref = _reference(x, gamma, beta, moving_mean, moving_var)
    assert jnp.allclose(y, y_ref, atol=1e-4, rtol=1e-4)
    assert jnp.allclose(new_mm, mm_ref, atol=1e-5)
    assert jnp.allclose(new_mv, mv_ref, atol=1e-5)

    print("KERNEL_OK")
</pallas_src>

<mosaic_0001>
module attributes {stable_mosaic.version = 11 : i64} {
  func.func @_stats_kernel(%arg0: i32, %arg1: i32, %arg2: memref<1x4x256xf32, #tpu.memory_space<vmem>>, %arg3: memref<1x4xf32, #tpu.memory_space<vmem>>, %arg4: memref<1x4xf32, #tpu.memory_space<vmem>>, %arg5: memref<1x4xf32, #tpu.memory_space<vmem>>, %arg6: memref<1x4xf32, #tpu.memory_space<vmem>>, %arg7: memref<1x4xf32, #tpu.memory_space<vmem>>, %arg8: memref<1x4xf32, #tpu.memory_space<vmem>>, %arg9: memref<1x4xf32, #tpu.memory_space<vmem>>, %arg10: memref<1x4xf32, #tpu.memory_space<vmem>>, %arg11: memref<1x4xf32, #tpu.memory_space<vmem>>, %arg12: memref<1x4xf32, #tpu.memory_space<vmem>>) attributes {dimension_semantics = [#tpu.dimension_semantics<arbitrary>, #tpu.dimension_semantics<arbitrary>], iteration_bounds = array<i64: 2, 1>, scalar_prefetch = 0 : i64, scratch_operands = 2 : i64, tpu.core_type = #tpu.core_type<tc>, window_params = [{transform_indices = @transform_0, window_bounds = array<i64: 1, 4, 256>}, {pipeline_mode = #tpu.pipeline_mode<synchronous>, transform_indices = @transform_1, window_bounds = array<i64: 1, 4>}, {pipeline_mode = #tpu.pipeline_mode<synchronous>, transform_indices = @transform_2, window_bounds = array<i64: 1, 4>}, {pipeline_mode = #tpu.pipeline_mode<synchronous>, transform_indices = @transform_3, window_bounds = array<i64: 1, 4>}, {pipeline_mode = #tpu.pipeline_mode<synchronous>, transform_indices = @transform_4, window_bounds = array<i64: 1, 4>}, {pipeline_mode = #tpu.pipeline_mode<synchronous>, transform_indices = @transform_5, window_bounds = array<i64: 1, 4>}, {pipeline_mode = #tpu.pipeline_mode<synchronous>, transform_indices = @transform_6, window_bounds = array<i64: 1, 4>}, {pipeline_mode = #tpu.pipeline_mode<synchronous>, transform_indices = @transform_7, window_bounds = array<i64: 1, 4>}, {pipeline_mode = #tpu.pipeline_mode<synchronous>, transform_indices = @transform_8, window_bounds = array<i64: 1, 4>}]} {
    %c0_i32 = arith.constant 0 : i32
    %0 = arith.cmpi eq, %arg0, %c0_i32 : i32
    %c0_i32_0 = arith.constant 0 : i32
    %1 = arith.cmpi eq, %arg1, %c0_i32_0 : i32
    %2 = arith.andi %0, %1 : i1
    %c1_i32 = arith.constant 1 : i32
    %3 = arith.cmpi eq, %arg0, %c1_i32 : i32
    %c0_i32_1 = arith.constant 0 : i32
    %4 = arith.cmpi eq, %arg1, %c0_i32_1 : i32
    %5 = arith.andi %3, %4 : i1
    %6 = arith.extui %2 : i1 to i32
    %c0_i32_2 = arith.constant 0 : i32
    %7 = arith.cmpi ne, %6, %c0_i32_2 : i32
    scf.if %7 {
      %cst_15 = arith.constant 0.000000e+00 : f32
      %20 = vector.broadcast %cst_15 : f32 to vector<1x4xf32>
      %c0_16 = arith.constant 0 : index
      %c0_17 = arith.constant 0 : index
      %21 = vector.load %arg11[%c0_16, %c0_17] : memref<1x4xf32, #tpu.memory_space<vmem>>, vector<1x4xf32>
      tpu.vector_store %arg11[%c0_16, %c0_17], %20 {strides = array<i32>} : memref<1x4xf32, #tpu.memory_space<vmem>>, vector<1x4xf32>,
      %cst_18 = arith.constant 0.000000e+00 : f32
      %22 = vector.broadcast %cst_18 : f32 to vector<1x4xf32>
      %c0_19 = arith.constant 0 : index
      %c0_20 = arith.constant 0 : index
      %23 = vector.load %arg12[%c0_19, %c0_20] : memref<1x4xf32, #tpu.memory_space<vmem>>, vector<1x4xf32>
      tpu.vector_store %arg12[%c0_19, %c0_20], %22 {strides = array<i32>} : memref<1x4xf32, #tpu.memory_space<vmem>>, vector<1x4xf32>,
    } else {
    }
    %c0 = arith.constant 0 : index
    %c0_3 = arith.constant 0 : index
    %c0_4 = arith.constant 0 : index
    %8 = vector.load %arg2[%c0, %c0_3, %c0_4] : memref<1x4x256xf32, #tpu.memory_space<vmem>>, vector<1x4x256xf32>
    %c0_5 = arith.constant 0 : index
    %c0_6 = arith.constant 0 : index
    %9 = vector.load %arg11[%c0_5, %c0_6] : memref<1x4xf32, #tpu.memory_space<vmem>>, vector<1x4xf32>
    %cst = arith.constant dense<0.000000e+00> : vector<1x4xf32>
    %10 = vector.multi_reduction <add>, %8, %cst [2] : vector<1x4x256xf32> to vector<1x4xf32>
    %11 = arith.addf %9, %10 : vector<1x4xf32>
    %c0_7 = arith.constant 0 : index
    %c0_8 = arith.constant 0 : index
    %12 = vector.load %arg11[%c0_7, %c0_8] : memref<1x4xf32, #tpu.memory_space<vmem>>, vector<1x4xf32>
    tpu.vector_store %arg11[%c0_7, %c0_8], %11 {strides = array<i32>} : memref<1x4xf32, #tpu.memory_space<vmem>>, vector<1x4xf32>,
    %c0_9 = arith.constant 0 : index
    %c0_10 = arith.constant 0 : index
    %13 = vector.load %arg12[%c0_9, %c0_10] : memref<1x4xf32, #tpu.memory_space<vmem>>, vector<1x4xf32>
    %14 = arith.mulf %8, %8 : vector<1x4x256xf32>
    %cst_11 = arith.constant dense<0.000000e+00> : vector<1x4xf32>
    %15 = vector.multi_reduction <add>, %14, %cst_11 [2] : vector<1x4x256xf32> to vector<1x4xf32>
    %16 = arith.addf %13, %15 : vector<1x4xf32>
    %c0_12 = arith.constant 0 : index
    %c0_13 = arith.constant 0 : index
    %17 = vector.load %arg12[%c0_12, %c0_13] : memref<1x4xf32, #tpu.memory_space<vmem>>, vector<1x4xf32>
    tpu.vector_store %arg12[%c0_12, %c0_13], %16 {strides = array<i32>} : memref<1x4xf32, #tpu.memory_space<vmem>>, vector<1x4xf32>,
    %18 = arith.extui %5 : i1 to i32
    %c0_i32_14 = arith.constant 0 : i32
    %19 = arith.cmpi ne, %18, %c0_i32_14 : i32
    scf.if %19 {
      %c0_15 = arith.constant 0 : index
      %c0_16 = arith.constant 0 : index
      %20 = vector.load %arg11[%c0_15, %c0_16] : memref<1x4xf32, #tpu.memory_space<vmem>>, vector<1x4xf32>
      %cst_17 = arith.constant 0.001953125 : f32
      %21 = vector.broadcast %cst_17 : f32 to vector<1x4xf32>
      %22 = arith.mulf %20, %21 : vector<1x4xf32>
      %c0_18 = arith.constant 0 : index
      %c0_19 = arith.constant 0 : index
      %23 = vector.load %arg12[%c0_18, %c0_19] : memref<1x4xf32, #tpu.memory_space<vmem>>, vector<1x4xf32>
      %cst_20 = arith.constant 0.001953125 : f32
      %24 = vector.broadcast %cst_20 : f32 to vector<1x4xf32>
      %25 = arith.mulf %23, %24 : vector<1x4xf32>
      %26 = arith.mulf %22, %22 : vector<1x4xf32>
      %27 = arith.subf %25, %26 : vector<1x4xf32>
      %cst_21 = arith.constant 0.000000e+00 : f32
      %28 = vector.broadcast %cst_21 : f32 to vector<1x4xf32>
      %29 = arith.maximumf %27, %28 : vector<1x4xf32>
      %cst_22 = arith.constant 9.99999974E-6 : f32
      %30 = vector.broadcast %cst_22 : f32 to vector<1x4xf32>
      %31 = arith.addf %29, %30 : vector<1x4xf32>
      %32 = math.rsqrt %31 : vector<1x4xf32>
      %c0_23 = arith.constant 0 : index
      %c0_24 = arith.constant 0 : index
      %33 = vector.load %arg3[%c0_23, %c0_24] : memref<1x4xf32, #tpu.memory_space<vmem>>, vector<1x4xf32>
      %34 = arith.mulf %33, %32 : vector<1x4xf32>
      %c0_25 = arith.constant 0 : index
      %c0_26 = arith.constant 0 : index
      %35 = vector.load %arg4[%c0_25, %c0_26] : memref<1x4xf32, #tpu.memory_space<vmem>>, vector<1x4xf32>
      %36 = arith.mulf %22, %34 : vector<1x4xf32>
      %37 = arith.subf %35, %36 : vector<1x4xf32>
      %c0_27 = arith.constant 0 : index
      %c0_28 = arith.constant 0 : index
      %38 = vector.load %arg7[%c0_27, %c0_28] : memref<1x4xf32, #tpu.memory_space<vmem>>, vector<1x4xf32>
      tpu.vector_store %arg7[%c0_27, %c0_28], %34 {strides = array<i32>} : memref<1x4xf32, #tpu.memory_space<vmem>>, vector<1x4xf32>,
      %c0_29 = arith.constant 0 : index
      %c0_30 = arith.constant 0 : index
      %39 = vector.load %arg8[%c0_29, %c0_30] : memref<1x4xf32, #tpu.memory_space<vmem>>, vector<1x4xf32>
      tpu.vector_store %arg8[%c0_29, %c0_30], %37 {strides = array<i32>} : memref<1x4xf32, #tpu.memory_space<vmem>>, vector<1x4xf32>,
      %c0_31 = arith.constant 0 : index
      %c0_32 = arith.constant 0 : index
      %40 = vector.load %arg5[%c0_31, %c0_32] : memref<1x4xf32, #tpu.memory_space<vmem>>, vector<1x4xf32>
      %cst_33 = arith.constant 0.899999976 : f32
      %41 = vector.broadcast %cst_33 : f32 to vector<1x4xf32>
      %42 = arith.mulf %41, %40 : vector<1x4xf32>
      %cst_34 = arith.constant 1.000000e-01 : f32
      %43 = vector.broadcast %cst_34 : f32 to vector<1x4xf32>
      %44 = arith.mulf %43, %22 : vector<1x4xf32>
      %45 = arith.addf %42, %44 : vector<1x4xf32>
      %c0_35 = arith.constant 0 : index
      %c0_36 = arith.constant 0 : index
      %46 = vector.load %arg9[%c0_35, %c0_36] : memref<1x4xf32, #tpu.memory_space<vmem>>, vector<1x4xf32>
      tpu.vector_store %arg9[%c0_35, %c0_36], %45 {strides = array<i32>} : memref<1x4xf32, #tpu.memory_space<vmem>>, vector<1x4xf32>,
      %c0_37 = arith.constant 0 : index
      %c0_38 = arith.constant 0 : index
      %47 = vector.load %arg6[%c0_37, %c0_38] : memref<1x4xf32, #tpu.memory_space<vmem>>, vector<1x4xf32>
      %cst_39 = arith.constant 0.899999976 : f32
      %48 = vector.broadcast %cst_39 : f32 to vector<1x4xf32>
      %49 = arith.mulf %48, %47 : vector<1x4xf32>
      %cst_40 = arith.constant 1.000000e-01 : f32
      %50 = vector.broadcast %cst_40 : f32 to vector<1x4xf32>
      %51 = arith.mulf %50, %29 : vector<1x4xf32>
      %52 = arith.addf %49, %51 : vector<1x4xf32>
      %c0_41 = arith.constant 0 : index
      %c0_42 = arith.constant 0 : index
      %53 = vector.load %arg10[%c0_41, %c0_42] : memref<1x4xf32, #tpu.memory_space<vmem>>, vector<1x4xf32>
      tpu.vector_store %arg10[%c0_41, %c0_42], %52 {strides = array<i32>} : memref<1x4xf32, #tpu.memory_space<vmem>>, vector<1x4xf32>,
    } else {
    }
    return
  }
  func.func @transform_0(%arg0: i32, %arg1: i32) -> (i32, i32, i32) {
    %c0_i32 = arith.constant 0 : i32
    %c0_i32_0 = arith.constant 0 : i32
    return %arg0, %c0_i32, %arg1 : i32, i32, i32
  }
  func.func @transform_1(%arg0: i32, %arg1: i32) -> (i32, i32) {
    %c0_i32 = arith.constant 0 : i32
    %c0_i32_0 = arith.constant 0 : i32
    %c0_i32_1 = arith.constant 0 : i32
    return %c0_i32, %c0_i32_0 : i32, i32
  }
  func.func @transform_2(%arg0: i32, %arg1: i32) -> (i32, i32) {
    %c0_i32 = arith.constant 0 : i32
    %c0_i32_0 = arith.constant 0 : i32
    %c0_i32_1 = arith.constant 0 : i32
    return %c0_i32, %c0_i32_0 : i32, i32
  }
  func.func @transform_3(%arg0: i32, %arg1: i32) -> (i32, i32) {
    %c0_i32 = arith.constant 0 : i32
    %c0_i32_0 = arith.constant 0 : i32
    %c0_i32_1 = arith.constant 0 : i32
    return %c0_i32, %c0_i32_0 : i32, i32
  }
  func.func @transform_4(%arg0: i32, %arg1: i32) -> (i32, i32) {
    %c0_i32 = arith.constant 0 : i32
    %c0_i32_0 = arith.constant 0 : i32
    %c0_i32_1 = arith.constant 0 : i32
    return %c0_i32, %c0_i32_0 : i32, i32
  }
  func.func @transform_5(%arg0: i32, %arg1: i32) -> (i32, i32) {
    %c0_i32 = arith.constant 0 : i32
    %c0_i32_0 = arith.constant 0 : i32
    %c0_i32_1 = arith.constant 0 : i32
    return %c0_i32, %c0_i32_0 : i32, i32
  }
  func.func @transform_6(%arg0: i32, %arg1: i32) -> (i32, i32) {
    %c0_i32 = arith.constant 0 : i32
    %c0_i32_0 = arith.constant 0 : i32
    %c0_i32_1 = arith.constant 0 : i32
    return %c0_i32, %c0_i32_0 : i32, i32
  }
  func.func @transform_7(%arg0: i32, %arg1: i32) -> (i32, i32) {
    %c0_i32 = arith.constant 0 : i32
    %c0_i32_0 = arith.constant 0 : i32
    %c0_i32_1 = arith.constant 0 : i32
    return %c0_i32, %c0_i32_0 : i32, i32
  }
  func.func @transform_8(%arg0: i32, %arg1: i32) -> (i32, i32) {
    %c0_i32 = arith.constant 0 : i32
    %c0_i32_0 = arith.constant 0 : i32
    %c0_i32_1 = arith.constant 0 : i32
    return %c0_i32, %c0_i32_0 : i32, i32
  }
}

</mosaic_0001>

<bundles_post_ra>
// kernel: tpu_custom_call.1
= control target key start
LH: loop header
LB: loop body
LE: loop exit
PB: predicated region body
PF: predicated region fallthrough
CT: control target
= control target key end

     0   :  { %14 = vsyncpa [#allocation5], 0  ;;  %s1169_s0 = inlined_call_operand.hbm [shape: f32[2,4,256], index: 0, kind: input, shape index: {}]   ;;  %s1170_s1 = inlined_call_operand.vmem [shape: f32[1,4], index: 1, kind: input, shape index: {}]   ;;  %s1171_s2 = inlined_call_operand.vmem [shape: f32[1,4], index: 2, kind: input, shape index: {}]   ;;  %s1172_s3 = inlined_call_operand.vmem [shape: f32[1,4], index: 3, kind: input, shape index: {}]   ;;  %s1173_s4 = inlined_call_operand.vmem [shape: f32[1,4], index: 4, kind: input, shape index: {}]   ;;  %s1174_s5 = inlined_call_operand.hbm [shape: f32[1,4], index: 5, kind: output, shape index: {0}]   ;;  %s1175_s6 = inlined_call_operand.hbm [shape: f32[1,4], index: 6, kind: output, shape index: {1}]   ;;  %s1176_s7 = inlined_call_operand.hbm [shape: f32[1,4], index: 7, kind: output, shape index: {2}]   ;;  %s1177_s8 = inlined_call_operand.hbm [shape: f32[1,4], index: 8, kind: output, shape index: {3}]  }
   0x1   :  { %16 = vsyncpa [#allocation5 + $0x1], 0 }
   0x2   :  { %17 = vsyncpa [#allocation6], 0 }
   0x3   :  { %18 = vsyncpa [#allocation9], 0 }
   0x4   :  { %19 = vsyncpa [#allocation12], 0  ;;  %s1004_s27 = smov 0   ;;  %s1006_s28 = smov 0  }
   0x5   :  { %s1008_s29 = smov 0   ;;  %s1010_s30 = smov 0  }
   0x6   :  { %s1012_s9 = smov 0   ;;  %s1014_s10 = smov 0  }
   0x7 LB: > { %s649_s11 = sadd.s32 4294967295, %s949_s10   ;;  %s37_s12 = sadd.s32 1, %s945_s9  ;;  %s949_s10 = sphi %s1014_s10, %s25_s10   ;;  %s945_s9 = sphi %s1012_s9, %s1186_s9   ;;  %s941_s30 = sphi %s1010_s30, %s1185_s30   ;;  %s937_s29 = sphi %s1008_s29, %s1184_s29   ;;  %s933_s28 = sphi %s1006_s28, %s1183_s28   ;;  %s929_s27 = sphi %s1004_s27, %s1182_s27  }
   0x8   : > { %p39_p0 = scmp.ge.s32.totalorder %s37_s12, 2  ;;  %s46_s13 = sadd.s32 1, %s937_s29 }
   0x9   : > { %p53_p1 = scmp.ne.s32.totalorder %s937_s29, %s933_s28  ;;  %p54_p2 = scmp.eq.s32.totalorder %s949_s10, 0 }
   0xa   : > { %s1188_s12 = smov (%p39_p0, %s37_s12), 0  ;;  %p59_p4 = scmp.ne.s32.totalorder %s933_s28, %s929_s27 }
   0xb   : > { %p1040_p3 = por %p54_p2, %p53_p1  ;;  %s41_s15 = ssub.s32 %s945_s9, %s1188_s12 }
   0xc   : > { %p60_p5 = scmp.eq.s32.totalorder %s649_s11, 0  ;;  %p44_p6 = scmp.eq.s32.totalorder %s41_s15, 0 }
   0xd   : > { %p694_p8 = scmp.lt.s32.totalorder %s949_s10, 2  ;;  %s263_s18 = sand.u32 1, %s937_s29  }
   0xe   : > { %p1049_p7 = por %p60_p5, %p59_p4  ;;  %s669_s19 = sshll.u32 %s945_s9, 7 }
   0xf   : > { %s1055_s17 = scalar_select %p44_p6, %s937_s29, %s46_s13  }
  0x10   : > { %s652_s20 = sshll.u32 %s263_s18, 3  ;;  %s275_s23 = scalar_lea.hbm %s1169_s0, %s669_s19 }
  0x11   : > { %s267_s24 = scalar_lea.vmem [#allocation4], %s652_s20  ;;  %p1064_p9 = pnand %p694_p8, %p1040_p3 }
  0x12   : > { %s277_s25 = sshll.u32 %s267_s24, 4  ;;  %p655_p10 = scmp.ge.s32.totalorder %s949_s10, 1  ;;  %s278_s25 = int_to_ptr.vmem [resolvable:$true] %s277_s25 }
  0x13   : > { %p282_p11 = scmp.lt.s32.totalorder %s949_s10, 3  ;;  %s264_s27 = scalar_lea.sflag [#allocation5], %s263_s18 }
  0x14   : > { %p765_p12 = pneg %p1064_p9  ;;  %s776_s13 = scalar_lea.vmem %s278_s25, 128 }
  0x15   : > { %p777_p13 = scmp.ne.s32.totalorder %s278_s25, %s776_s13  ;;  %s951_s15 = smov [#allocation4]  }
  0x16   : > { %s781_s19 = sshll.u32 %s951_s15, 4  ;;  %s782_s19 = int_to_ptr.vmem [resolvable:$false] %s781_s19 }
  0x17   : > { %p779_p0 = pnand %p777_p13, %p765_p12  ;;  %s783_s20 = scalar_lea.vmem %s782_s19, 256 }
  0x18   : > { %p784_p2 = scmp.lt.s32.totalorder %s278_s25, %s782_s19  ;;  %p785_p3 = scmp.lt.s32.totalorder %s783_s20, %s776_s13 }
  0x19   : > { %p780_p1 = pneg %p779_p0 }
  0x1a   : > { %p786_p4 = por %p785_p3, %p784_p2 }
  0x1c   : > { %p787_p5 = pnand %p786_p4, %p780_p1 }
  0x1e   : > { %790 = shalt.err (!%p787_p5)
}
  0x1f   : > { %693 = dma.hbm_to_vmem [thread:$0]  (!%p1064_p9), %s275_s23, 128, %s278_s25, %s264_s27  }
  0x20   : > { %p283_p6 = pnand %p655_p10, %p282_p11 }
  0x21   : > { %s288_s14 = sand.u32 (!%p283_p6), 1, %s933_s28  }
  0x22   : > { %286 = sbr.rel (%p283_p6) target bundleno = 431 (0x1af), region = 40  ;;  %s656_s18 = sshll.u32 (!%p283_p6), %s288_s14, 3 }
  0x23   : > { %s289_s21 = scalar_lea.sflag (!%p283_p6), [#allocation5], %s288_s14  ;;  %s292_s22 = scalar_lea.vmem (!%p283_p6), [#allocation4], %s656_s18 }
  0x27   : > { %912 = dma.done.wait (%p1049_p7), %s289_s21, 128  }
  0x28   : > { %914 = vsyncadd (%p1049_p7), %s289_s21, 4294967168  ;;  %p321_p8 = scmp.eq.s32.totalorder %s941_s30, 0  ;;  %p325_p12 = scmp.eq.s32.totalorder %s941_s30, 1 }
  0x29   : > { %vm330_vm0 = vcmask (%p321_p8), 24576   ;;  %v952_v0 = vmov (%p321_p8), 0.0  }
  0x2a   : > { %329 = sbr.rel (!%p321_p8) target bundleno = 47 (0x2f), region = 48  ;;  %331 = vst.msk [vmem:[#allocation2] sm:$0x1] (%p321_p8), %vm330_vm0, %v952_v0  ;;  %332 = vst.msk [vmem:[#allocation3] sm:$0x1] (%p321_p8), %vm330_vm0, %v952_v0 }
  0x2f PF: > { %v333_v1 = vld [vmem:[%s292_s22] sm:$0xff]  ;;  %vm338_vm1 = vcmask 1043456   ;;  %v953_v11 = vmov 0   ;;  %v345_v12 = vlaneseq  ;;  %v954_v16 = vmov 1966171168  }
  0x30   : > { %v336_v2 = vcombine.high %v333_v1, %v333_v1  ;;  %v339_v3 = vsel %vm338_vm1, %v333_v1, 0.0  ;;  %v413_v4 = vmul.f32 %v333_v1, %v333_v1  ;;  %758 = vset.pattern.permute.xlu1 %v953_v11  ;;  %759 = vset.pattern.permute.xlu0 %v953_v11  ;;  %v364_v17 = vunpack.c.l.s4 %v954_v16  ;;  %v505_v62 = vld [vmem:[%s1172_s3] sm:$0x1] (%p325_p12) }
  0x31   : > { %v346_v13 = vshrl.u32 %v345_v12, 7  ;;  %v389_v14 = vand.u32 127, %v345_v12  ;;  %v334_v49 = vld [vmem:[#allocation2] sm:$0x1]  ;;  %vm410_vm2 = vcmask 24576  }
  0x32   : > { %v340_v5 = vsel %vm338_vm1, %v336_v2, 0.0  ;;  %v415_v6 = vcombine.high %v413_v4, %v413_v4  ;;  %v417_v7 = vsel %vm338_vm1, %v413_v4, 0.0  ;;  %v365_v22 = vunpack.c.0.s8 %v364_v17  ;;  %v412_v55 = vld [vmem:[#allocation3] sm:$0x1]  ;;  %v510_v2 = vld [vmem:[%s1173_s4] sm:$0x1] (%p325_p12) }
  0x33   : > { %v341_v8 = vadd.f32 %v340_v5, %v339_v3  ;;  %v392_v15 = vsub.s32 %v389_v14, %v346_v13  ;;  %v347_v18 = vsub.s32 0, %v346_v13  ;;  %v351_v19 = vsub.s32 1, %v346_v13 }
  0x34   : > { %v418_v9 = vsel %vm338_vm1, %v415_v6, 0.0  ;;  %v355_v20 = vsub.s32 2, %v346_v13  ;;  %v359_v21 = vsub.s32 3, %v346_v13  ;;  %v368_v28 = vsub.s32 %v365_v22, %v346_v13  ;;  %v500_v13 = vld [vmem:[%s1171_s2] sm:$0x1] (%p325_p12) }
  0x35   : > { %342 = vadd.xlane.f32.xlu0 %v341_v8  ;;  %v419_v10 = vadd.f32 %v418_v9, %v417_v7  ;;  %v506_v63 = vmul.f32 (%p325_p12), 0.9, %v505_v62  ;;  %v511_v6 = vmul.f32 (%p325_p12), 0.9, %v510_v2 }
  0x39   : > { %420 = vadd.xlane.f32.xlu0 %v419_v10  ;;  %v498_v10 = vld [vmem:[%s1170_s1] sm:$0x1] (%p325_p12) }
  0xbe   : > { %v343_v23 = vpop.xlane.xlu0 %342 }
  0xbf   : > { %v348_v24 = vrot.slane %v343_v23, %v347_v18  ;;  %v352_v25 = vrot.slane %v343_v23, %v351_v19  ;;  %v356_v26 = vrot.slane %v343_v23, %v355_v20  ;;  %v360_v27 = vrot.slane %v343_v23, %v359_v21 }
  0xc1   : > { %v361_v29 = vcombine.low %v348_v24, %v352_v25  ;;  %v362_v30 = vcombine.low %v356_v26, %v360_v27 }
  0xc2   : > { %v421_v31 = vpop.xlane.xlu0 %420 }
  0xc3   : > { %v426_v32 = vrot.slane %v421_v31, %v347_v18  ;;  %v430_v33 = vrot.slane %v421_v31, %v351_v19  ;;  %v434_v34 = vrot.slane %v421_v31, %v355_v20  ;;  %v438_v35 = vrot.slane %v421_v31, %v359_v21 }
  0xc4   : > { %v369_v36 = vrot.slane %v361_v29, %v368_v28  ;;  %v376_v37 = vrot.slane %v362_v30, %v368_v28 }
  0xc5   : > { %v439_v38 = vcombine.low %v426_v32, %v430_v33  ;;  %v440_v39 = vcombine.low %v434_v34, %v438_v35 }
  0xc6   : > { %v377_v40 = vcombine.low %v369_v36, %v376_v37 }
  0xc7   : > { %v447_v41 = vrot.slane %v439_v38, %v368_v28  ;;  %v454_v42 = vrot.slane %v440_v39, %v368_v28 }
  0xc8   : > { %v384_v43 = vrot.slane %v377_v40, %v368_v28 }
  0xc9   : > { %v455_v44 = vcombine.low %v447_v41, %v454_v42 }
  0xca   : > { %386 = vperm.xlu1 %758, %v384_v43  }
  0xcb   : > { %v462_v45 = vrot.slane %v455_v44, %v368_v28 }
  0xce   : > { %464 = vperm.xlu1 %758, %v462_v45  }
 0x145   : > { %v387_v46 = vpop.permute.xlu1 %386 }
 0x146   : > { %v393_v47 = vrot.slane %v387_v46, %v392_v15 }
 0x148   : > { %v400_v48 = vrot.slane %v393_v47, %v368_v28 }
 0x149   : > { %v465_v50 = vpop.permute.xlu1 %464 }
 0x14a   : > { %v407_v51 = vrot.slane %v400_v48, %v368_v28  ;;  %v469_v52 = vrot.slane %v465_v50, %v392_v15 }
 0x14c   : > { %v409_v53 = vadd.f32 %v407_v51, %v334_v49  ;;  %v476_v54 = vrot.slane %v469_v52, %v368_v28 }
 0x14e   : > { %411 = vst.msk [vmem:[#allocation2] sm:$0x1] %vm410_vm2, %v409_v53  ;;  %v483_v56 = vrot.slane %v476_v54, %v368_v28  ;;  %488 = sbr.rel (!%p325_p12) target bundleno = 375 (0x177), region = 52 }
 0x150   : > { %v485_v57 = vadd.f32 %v483_v56, %v412_v55 }
 0x152   : > { %486 = vst.msk [vmem:[#allocation3] sm:$0x1] %vm410_vm2, %v485_v57 }
 0x155   : > { %v489_v58 = vld [vmem:[#allocation2] sm:$0x1] }
 0x156   : > { %v490_v60 = vmul.f32 0.001953125, %v489_v58 }
 0x158   : > { %v493_v0 = vmul.f32 %v490_v60, %v490_v60  ;;  %v507_v1 = vmul.f32 0.1, %v490_v60 }
 0x159   : > { %v491_v59 = vld [vmem:[#allocation3] sm:$0x1] }
 0x15a   : > { %v492_v61 = vmul.f32 0.001953125, %v491_v59  ;;  %v508_v4 = vadd.f32 %v507_v1, %v506_v63 }
 0x15c   : > { %v494_v3 = vsub.f32 %v492_v61, %v493_v0  ;;  %509 = vst.msk [vmem:[#allocation10] sm:$0x1] %vm410_vm2, %v508_v4 }
 0x15e   : > { %v495_v5 = vmax.f32 %v494_v3, 0.0 }
 0x160   : > { %v496_v7 = vadd.f32 1e-05, %v495_v5  ;;  %v512_v8 = vmul.f32 0.1, %v495_v5 }
 0x162   : > { %761 = vrsqrt.f32 %v496_v7  ;;  %v513_v9 = vadd.f32 %v512_v8, %v511_v6 }
 0x164   : > { %514 = vst.msk [vmem:[#allocation11] sm:$0x1] %vm410_vm2, %v513_v9 }
 0x16f   : > { %v762_v11 = vpop.eup %761 }
 0x170   : > { %v499_v12 = vmul.f32 %v762_v11, %v498_v10 }
 0x172   : > { %503 = vst.msk [vmem:[#allocation7] sm:$0x1] %vm410_vm2, %v499_v12  ;;  %v501_v14 = vmul.f32 %v499_v12, %v490_v60 }
 0x174   : > { %v502_v15 = vsub.f32 %v500_v13, %v501_v14 }
 0x176   : > { %504 = vst.msk [vmem:[#allocation8] sm:$0x1] %vm410_vm2, %v502_v15 }
 0x177 PF: > { %p1107_p7 = scmp.eq.s32.totalorder %s649_s11, 1  ;;  %s955_s19 = smov [#allocation8]  }
 0x178   : > { %s533_s20 = sshll.u32 %s955_s19, 4  ;;  %s534_s20 = int_to_ptr.vmem [resolvable:$true] %s533_s20 }
 0x179   : > { %s791_s14 = scalar_lea.vmem %s534_s20, 16  ;;  %s797_s18 = scalar_lea.vmem %s534_s20, 32 }
 0x17a   : > { %p792_p9 = scmp.ne.s32.totalorder %s534_s20, %s791_s14  ;;  %p798_p13 = scmp.lt.s32.totalorder %s534_s20, %s534_s20 }
 0x17b   : > { %p799_p0 = scmp.lt.s32.totalorder %s797_s18, %s791_s14 }
 0x17c   : > { %p793_p10 = pnand %p792_p9, %p1107_p7 }
 0x17d   : > { %p800_p1 = por %p799_p0, %p798_p13 }
 0x17e   : > { %p794_p11 = pneg %p793_p10 }
 0x180   : > { %p801_p2 = pnand %p800_p1, %p794_p11 }
 0x182   : > { %804 = shalt.err (!%p801_p2)
}
 0x183   : > { %677 = dma.vmem_to_hbm [thread:$0]  (%p1107_p7), %s534_s20, 16, %s1175_s6, [#allocation9]  }
 0x184   : > { %s956_s22 = smov [#allocation7]   ;;  %s957_s23 = smov [#allocation10]  }
 0x185   : > { %s522_s16 = sshll.u32 %s956_s22, 4  ;;  %s544_s24 = sshll.u32 %s957_s23, 4  ;;  %s523_s16 = int_to_ptr.vmem [resolvable:$true] %s522_s16  ;;  %s545_s24 = int_to_ptr.vmem [resolvable:$true] %s544_s24 }
 0x186   : > { %s815_s25 = scalar_lea.vmem %s523_s16, 16  ;;  %s821_s30 = scalar_lea.vmem %s523_s16, 32 }
 0x187   : > { %p816_p3 = scmp.ne.s32.totalorder %s523_s16, %s815_s25  ;;  %p822_p6 = scmp.lt.s32.totalorder %s523_s16, %s523_s16 }
 0x188   : > { %p823_p8 = scmp.lt.s32.totalorder %s821_s30, %s815_s25 }
 0x189   : > { %p817_p4 = pnand %p816_p3, %p1107_p7 }
 0x18a   : > { %p824_p12 = por %p823_p8, %p822_p6 }
 0x18b   : > { %p818_p5 = pneg %p817_p4 }
 0x18d   : > { %p825_p9 = pnand %p824_p12, %p818_p5 }
 0x18f   : > { %828 = shalt.err (!%p825_p9)
}
 0x190   : > { %675 = dma.vmem_to_hbm [thread:$0]  (%p1107_p7), %s523_s16, 16, %s1174_s5, [#allocation6]  }
 0x191   : > { %s839_s13 = scalar_lea.vmem %s545_s24, 16  ;;  %s845_s19 = scalar_lea.vmem %s545_s24, 32 }
 0x192   : > { %p840_p10 = scmp.ne.s32.totalorder %s545_s24, %s839_s13  ;;  %p846_p0 = scmp.lt.s32.totalorder %s545_s24, %s545_s24 }
 0x193   : > { %p847_p1 = scmp.lt.s32.totalorder %s845_s19, %s839_s13 }
 0x194   : > { %p841_p11 = pnand %p840_p10, %p1107_p7 }
 0x195   : > { %p848_p2 = por %p847_p1, %p846_p0 }
 0x196   : > { %p842_p13 = pneg %p841_p11 }
 0x198   : > { %p849_p3 = pnand %p848_p2, %p842_p13 }
 0x19a   : > { %852 = shalt.err (!%p849_p3)
}
 0x19b   : > { %679 = dma.vmem_to_hbm [thread:$0]  (%p1107_p7), %s545_s24, 16, %s1176_s7, [#allocation9]  }
 0x19c   : > { %s958_s18 = smov [#allocation11]  }
 0x19d   : > { %s555_s11 = sshll.u32 %s958_s18, 4  ;;  %s556_s11 = int_to_ptr.vmem [resolvable:$true] %s555_s11 }
 0x19e   : > { %s863_s21 = scalar_lea.vmem %s556_s11, 16  ;;  %s869_s22 = scalar_lea.vmem %s556_s11, 32 }
 0x19f   : > { %p864_p4 = scmp.ne.s32.totalorder %s556_s11, %s863_s21  ;;  %p870_p8 = scmp.lt.s32.totalorder %s556_s11, %s556_s11 }
 0x1a0   : > { %p871_p12 = scmp.lt.s32.totalorder %s869_s22, %s863_s21 }
 0x1a1   : > { %p865_p5 = pnand %p864_p4, %p1107_p7 }
 0x1a2   : > { %p872_p9 = por %p871_p12, %p870_p8 }
 0x1a3   : > { %p866_p6 = pneg %p865_p5 }
 0x1a5   : > { %p873_p10 = pnand %p872_p9, %p866_p6 }
 0x1a7   : > { %876 = shalt.err (!%p873_p10)
}
 0x1a8   : > { %681 = dma.vmem_to_hbm [thread:$0]  (%p1107_p7), %s556_s11, 16, %s1177_s8, [#allocation12]  }
 0x1a9   : > { %916 = dma.done.wait (%p1107_p7), [#allocation6], 16  }
 0x1aa   : > { %918 = vsyncadd (%p1107_p7), [#allocation6], 4294967280 }
 0x1ab   : > { %920 = dma.done.wait (%p1107_p7), [#allocation9], 32  }
 0x1ac   : > { %922 = vsyncadd (%p1107_p7), [#allocation9], 4294967264 }
 0x1ad   : > { %924 = dma.done.wait (%p1107_p7), [#allocation12], 16  }
 0x1ae   : > { %926 = vsyncadd (%p1107_p7), [#allocation12], 4294967280 }
 0x1af PF: > { %s25_s10 = sadd.s32 1, %s949_s10   ;;  %s1182_s27 = smov %s933_s28 }
 0x1b0   : > { %p22_p11 = scmp.ge.s32.totalorder %s25_s10, 4   ;;  %s1183_s28 = smov %s937_s29 }
 0x1b1   : > { %s1184_s29 = smov %s1055_s17  ;;  %s1185_s30 = smov %s945_s9 }
 0x1b2   : > { %s1186_s9 = smov %s1188_s12  ;;  %24 = sbr.rel (!%p22_p11) target bundleno = 7 (0x7), region = 109 }
 0x1b7   :  { %580 = vsyncpa [#allocation5], 1 }
 0x1b8   :  { %582 = vsyncpa [#allocation5 + $0x1], 1 }
 0x1b9   :  { %583 = vsyncpa [#allocation6], 1 }
 0x1ba   :  { %585 = vsyncpa [#allocation6 + $0x1], 1 }
 0x1bb   :  { %586 = vsyncpa [#allocation9], 1 }
 0x1bc   :  { %587 = vsyncpa [#allocation12], 1 }

</bundles_post_ra>
